<compile_context>
chip_gen: v6e
topology: v6e:2x2x1
jax: 0.10.0
libtpu: 0.0.40
codegen_flags: <defaults>
</compile_context>

<pallas_src>
import functools

import jax
import jax.numpy as jnp
from jax import lax
from jax.experimental import pallas as pl
from jax.experimental.pallas import tpu as pltpu


def _fused_pw_dw_kernel(x_ref, w1_ref, b1_ref, w2_ref, b2_ref, out_ref, *, W, K):
    """One grid step == Bt batch elements.  Channels on sublanes, flattened
    spatial (H*W) on the lane axis.

    x_ref   : (Bt, Cin,  HW)   activations (io dtype, bf16 by default)
    w1_ref  : (Cout, Cin)      pointwise weight (transposed), io dtype
    b1_ref  : (Cout, 1)        pointwise bias, f32
    w2_ref  : (K*K, Cout, 1)   depthwise weights, tap index t = kh*K + kw, stencil dtype
    b2_ref  : (Cout, 1)        depthwise bias, f32
    out_ref : (Bt, Cout, HW)   output (io dtype)
    """
    Bt = x_ref.shape[0]
    HW = x_ref.shape[2]
    P = K // 2            # matches Conv2d padding=K//2 ('same') only for odd K.
    sd = w2_ref.dtype     # stencil compute dtype (bf16 on v6e/v7x, f32 on v5e)

    # Hoisted single reads of all parameters.
    w1 = w1_ref[...]
    b1 = b1_ref[...]
    w2 = w2_ref[...]
    b2 = b2_ref[...]

    # ---- border masks generated in-kernel (no HBM operand), separable form ----
    pos = lax.broadcasted_iota(jnp.int32, (1, HW), 1)
    if W & (W - 1) == 0:
        wpos = jnp.bitwise_and(pos, W - 1)       # pos % W, power-of-two fast path
    else:
        wpos = lax.rem(pos, W)
    col_mask = {}
    row_mask = {}
    for d in range(-P, P + 1):
        if d == 0:
            continue
        cvalid = (wpos + d >= 0) & (wpos + d <= W - 1)          # 0 <= w+d < W
        rvalid = (pos + d * W >= 0) & (pos + d * W <= HW - 1)   # 0 <= h+d < H
        col_mask[d] = cvalid.astype(jnp.float32).astype(sd)     # (1, HW)
        row_mask[d] = rvalid.astype(jnp.float32).astype(sd)     # (1, HW)

    dh_order = [0] + [d for d in range(-P, P + 1) if d != 0]    # center first

    for b in range(Bt):   # Bt is small & static -> unrolled
        x = x_ref[b]                                                   # (Cin, HW)

        # ---- pointwise 1x1 conv on the MXU, f32 accumulation ----
        y = jnp.dot(w1, x, preferred_element_type=jnp.float32) + b1   # (Cout, HW) f32
        yb = y.astype(sd)

        # ---- column phase: shifted + column-masked copies (XLU rolls) ----
        cols = {0: yb}
        for dw in range(-P, P + 1):
            if dw == 0:
                continue
            z = pltpu.roll(yb, shift=(-dw) % HW, axis=1)               # z[p] = y[p+dw]
            cols[dw] = z * col_mask[dw]

        # ---- row phase: per-dh weight combine, one row roll + one row mask ----
        acc = None
        for dh in dh_order:
            comb = None
            for dw in range(-P, P + 1):
                t = (dh + P) * K + (dw + P)
                term = cols[dw] * w2[t]                                # (Cout, HW) sd
                comb = term if comb is None else comb + term
            if dh == 0:
                # acc init from the center row + depthwise bias (saves a zero-fill
                # and a trailing full-slab add).
                acc = comb.astype(jnp.float32) + b2
            else:
                comb = pltpu.roll(comb, shift=(-dh * W) % HW, axis=1)  # [p] <- [p+dh*W]
                comb = comb * row_mask[dh]
                acc = acc + comb.astype(jnp.float32)

        out_ref[b] = acc.astype(out_ref.dtype)


def _pick_batch_tile(B, Cin, Cout, HW, io_bytes):
    """Largest divisor of B that (a) fits a conservative VMEM budget (sized for
    v7x's 64 MiB/TC) and (b) keeps >= 2 grid steps when B >= 2 so both v7x
    TensorCores get work on the 'parallel' axis."""
    # double-buffered activation DMA + rough stencil working set (f32-equivalent slabs)
    per_b = 2 * (Cin + Cout) * HW * io_bytes + 8 * Cout * HW * 4
    budget = 16 * 1024 * 1024
    cap = max(1, budget // max(per_b, 1))
    target = B if B < 2 else max(1, min(cap, B // 2))
    bt = 1
    for d in range(1, B + 1):
        if B % d == 0 and d <= target:
            bt = d
    return bt


def depthwise_conv_pallas(x_nchw, w1, b1, w2, b2, kernel_size=3,
                          io_dtype=jnp.bfloat16, stencil_dtype=None):
    """x_nchw: (B, Cin, H, W); w1: (Cin, Cout); b1: (Cout,);
    w2: (K, K, Cout); b2: (Cout,).  Returns (B, Cout, H, W) in io_dtype.

    io_dtype      : DMA dtype for activations (bf16 halves HBM bytes; f32 = exact).
    stencil_dtype : dtype for the depthwise stencil math (defaults to io_dtype);
                    keep f32 on v5e (no bf16 VALU).  Accumulation is always f32.
    """
    B, Cin, H, W = x_nchw.shape
    Cout = w1.shape[1]
    K = kernel_size
    assert K % 2 == 1, "padding == K//2 matches 'same' only for odd kernel sizes"
    HW = H * W
    assert (K // 2) * W + K // 2 < HW, "image too small for the flattened-roll stencil"
    if stencil_dtype is None:
        stencil_dtype = io_dtype

    io_bytes = jnp.dtype(io_dtype).itemsize
    Bt = _pick_batch_tile(B, Cin, Cout, HW, io_bytes)
    grid_b = B // Bt

    # NCHW -> (B, C, HW): a pure reshape, no transpose / extra HBM pass.
    x = x_nchw.reshape(B, Cin, HW).astype(io_dtype)
    w1t = jnp.asarray(w1).astype(io_dtype).T                              # (Cout, Cin)
    b1c = jnp.asarray(b1, jnp.float32).reshape(Cout, 1)
    w2k = jnp.asarray(w2).astype(stencil_dtype).reshape(K * K, Cout)[..., None]  # (K*K, Cout, 1)
    b2c = jnp.asarray(b2, jnp.float32).reshape(Cout, 1)

    kernel = functools.partial(_fused_pw_dw_kernel, W=W, K=K)

    flops = B * (2 * HW * Cin * Cout + 2 * K * K * HW * Cout)
    bytes_accessed = (io_bytes * B * (Cin + Cout) * HW
                      + jnp.dtype(io_dtype).itemsize * Cin * Cout
                      + jnp.dtype(stencil_dtype).itemsize * K * K * Cout
                      + 4 * 2 * Cout)

    out_flat = pl.pallas_call(
        kernel,
        out_shape=jax.ShapeDtypeStruct((B, Cout, HW), io_dtype),
        grid_spec=pl.GridSpec(
            grid=(grid_b,),
            in_specs=[
                pl.BlockSpec((Bt, Cin, HW), lambda i: (i, 0, 0)),
                pl.BlockSpec((Cout, Cin), lambda i: (0, 0)),
                pl.BlockSpec((Cout, 1), lambda i: (0, 0)),
                pl.BlockSpec((K * K, Cout, 1), lambda i: (0, 0, 0)),
                pl.BlockSpec((Cout, 1), lambda i: (0, 0)),
            ],
            out_specs=pl.BlockSpec((Bt, Cout, HW), lambda i: (i, 0, 0)),
        ),
        compiler_params=pltpu.CompilerParams(
            dimension_semantics=("parallel",),
            vmem_limit_bytes=32 * 1024 * 1024),
        cost_estimate=pl.CostEstimate(
            flops=flops, transcendentals=0, bytes_accessed=int(bytes_accessed)),
    )(x, w1t, b1c, w2k, b2c)

    # (B, Cout, HW) -> NCHW: again a pure reshape.
    return out_flat.reshape(B, Cout, H, W)


def _reference(x_nchw, w1, b1, w2, b2):
    """Pure-JAX reference (NHWC convs) for correctness check."""
    Cin, Cout = w1.shape
    K = w2.shape[0]
    x = jnp.transpose(x_nchw, (0, 2, 3, 1))
    dn = ("NHWC", "HWIO", "NHWC")
    y = lax.conv_general_dilated(x, w1.reshape(1, 1, Cin, Cout),
                                 (1, 1), "VALID", dimension_numbers=dn) + b1
    z = lax.conv_general_dilated(y, w2.reshape(K, K, 1, Cout),
                                 (1, 1), "SAME", dimension_numbers=dn,
                                 feature_group_count=Cout) + b2
    return jnp.transpose(z, (0, 3, 1, 2))


if __name__ == "__main__":
    B, Cin, Cout, H, W, K = 2, 4, 8, 16, 16, 3

    key = jax.random.PRNGKey(0)
    kx, k1, k2, k3, k4 = jax.random.split(key, 5)

    x = jax.random.normal(kx, (B, Cin, H, W), jnp.float32)
    # deterministic synthetic parameters (shapes follow nn.Conv2d definitions)
    w1 = jax.random.normal(k1, (Cin, Cout), jnp.float32) * 0.1   # pointwise weight
    b1 = jax.random.normal(k2, (Cout,), jnp.float32) * 0.1       # pointwise bias
    w2 = jax.random.normal(k3, (K, K, Cout), jnp.float32) * 0.1  # depthwise weight
    b2 = jax.random.normal(k4, (Cout,), jnp.float32) * 0.1       # depthwise bias

    ref = _reference(x, w1, b1, w2, b2)

    # Exact-semantics path (f32 I/O + f32 stencil; what v5e should use).
    out_f32 = depthwise_conv_pallas(x, w1, b1, w2, b2, kernel_size=K,
                                    io_dtype=jnp.float32)
    out_f32 = jax.block_until_ready(out_f32)
    assert out_f32.shape == (B, Cout, H, W)
    assert jnp.allclose(out_f32, ref, atol=1e-4, rtol=1e-4)

    # Bandwidth-optimized path (bf16 activation I/O + bf16 stencil, f32 accumulation).
    out_bf16 = depthwise_conv_pallas(x, w1, b1, w2, b2, kernel_size=K,
                                     io_dtype=jnp.bfloat16)
    out_bf16 = jax.block_until_ready(out_bf16)
    assert out_bf16.shape == (B, Cout, H, W)
    assert jnp.allclose(out_bf16.astype(jnp.float32), ref, atol=3e-2, rtol=3e-2)

    print("KERNEL_OK")
</pallas_src>

<mosaic_0001>
module attributes {stable_mosaic.version = 11 : i64} {
  func.func @_fused_pw_dw_kernel(%arg0: i32, %arg1: memref<1x4x256xf32, #tpu.memory_space<vmem>>, %arg2: memref<8x4xf32, #tpu.memory_space<vmem>>, %arg3: memref<8x1xf32, #tpu.memory_space<vmem>>, %arg4: memref<9x8x1xf32, #tpu.memory_space<vmem>>, %arg5: memref<8x1xf32, #tpu.memory_space<vmem>>, %arg6: memref<1x8x256xf32, #tpu.memory_space<vmem>>) attributes {dimension_semantics = [#tpu.dimension_semantics<parallel>], iteration_bounds = array<i64: 2>, scalar_prefetch = 0 : i64, scratch_operands = 0 : i64, tpu.core_type = #tpu.core_type<tc>, window_params = [{transform_indices = @transform_0, window_bounds = array<i64: 1, 4, 256>}, {pipeline_mode = #tpu.pipeline_mode<synchronous>, transform_indices = @transform_1, window_bounds = array<i64: 8, 4>}, {pipeline_mode = #tpu.pipeline_mode<synchronous>, transform_indices = @transform_2, window_bounds = array<i64: 8, 1>}, {pipeline_mode = #tpu.pipeline_mode<synchronous>, transform_indices = @transform_3, window_bounds = array<i64: 9, 8, 1>}, {pipeline_mode = #tpu.pipeline_mode<synchronous>, transform_indices = @transform_4, window_bounds = array<i64: 8, 1>}, {transform_indices = @transform_5, window_bounds = array<i64: 1, 8, 256>}]} {
    %c0 = arith.constant 0 : index
    %c0_0 = arith.constant 0 : index
    %0 = vector.load %arg2[%c0, %c0_0] : memref<8x4xf32, #tpu.memory_space<vmem>>, vector<8x4xf32>
    %c0_1 = arith.constant 0 : index
    %c0_2 = arith.constant 0 : index
    %1 = vector.load %arg3[%c0_1, %c0_2] : memref<8x1xf32, #tpu.memory_space<vmem>>, vector<8x1xf32>
    %c0_3 = arith.constant 0 : index
    %c0_4 = arith.constant 0 : index
    %c0_5 = arith.constant 0 : index
    %2 = vector.load %arg4[%c0_3, %c0_4, %c0_5] : memref<9x8x1xf32, #tpu.memory_space<vmem>>, vector<9x8x1xf32>
    %c0_6 = arith.constant 0 : index
    %c0_7 = arith.constant 0 : index
    %3 = vector.load %arg5[%c0_6, %c0_7] : memref<8x1xf32, #tpu.memory_space<vmem>>, vector<8x1xf32>
    %4 = tpu.iota {dimensions = array<i32: 1>} : vector<1x256xi32>
    %c15_i32 = arith.constant 15 : i32
    %5 = vector.broadcast %c15_i32 : i32 to vector<1x256xi32>
    %6 = arith.andi %4, %5 : vector<1x256xi32>
    %c-1_i32 = arith.constant -1 : i32
    %7 = vector.broadcast %c-1_i32 : i32 to vector<1x256xi32>
    %8 = arith.addi %6, %7 : vector<1x256xi32>
    %c0_i32 = arith.constant 0 : i32
    %9 = vector.broadcast %c0_i32 : i32 to vector<1x256xi32>
    %10 = arith.cmpi sge, %8, %9 : vector<1x256xi32>
    %c-1_i32_8 = arith.constant -1 : i32
    %11 = vector.broadcast %c-1_i32_8 : i32 to vector<1x256xi32>
    %12 = arith.addi %6, %11 : vector<1x256xi32>
    %c15_i32_9 = arith.constant 15 : i32
    %13 = vector.broadcast %c15_i32_9 : i32 to vector<1x256xi32>
    %14 = arith.cmpi sle, %12, %13 : vector<1x256xi32>
    %15 = arith.andi %10, %14 : vector<1x256xi1>
    %c-16_i32 = arith.constant -16 : i32
    %16 = vector.broadcast %c-16_i32 : i32 to vector<1x256xi32>
    %17 = arith.addi %4, %16 : vector<1x256xi32>
    %c0_i32_10 = arith.constant 0 : i32
    %18 = vector.broadcast %c0_i32_10 : i32 to vector<1x256xi32>
    %19 = arith.cmpi sge, %17, %18 : vector<1x256xi32>
    %c-16_i32_11 = arith.constant -16 : i32
    %20 = vector.broadcast %c-16_i32_11 : i32 to vector<1x256xi32>
    %21 = arith.addi %4, %20 : vector<1x256xi32>
    %c255_i32 = arith.constant 255 : i32
    %22 = vector.broadcast %c255_i32 : i32 to vector<1x256xi32>
    %23 = arith.cmpi sle, %21, %22 : vector<1x256xi32>
    %24 = arith.andi %19, %23 : vector<1x256xi1>
    %25 = arith.extui %15 : vector<1x256xi1> to vector<1x256xi32>
    %26 = arith.sitofp %25 : vector<1x256xi32> to vector<1x256xf32>
    %27 = arith.extui %24 : vector<1x256xi1> to vector<1x256xi32>
    %28 = arith.sitofp %27 : vector<1x256xi32> to vector<1x256xf32>
    %c1_i32 = arith.constant 1 : i32
    %29 = vector.broadcast %c1_i32 : i32 to vector<1x256xi32>
    %30 = arith.addi %6, %29 : vector<1x256xi32>
    %c0_i32_12 = arith.constant 0 : i32
    %31 = vector.broadcast %c0_i32_12 : i32 to vector<1x256xi32>
    %32 = arith.cmpi sge, %30, %31 : vector<1x256xi32>
    %c1_i32_13 = arith.constant 1 : i32
    %33 = vector.broadcast %c1_i32_13 : i32 to vector<1x256xi32>
    %34 = arith.addi %6, %33 : vector<1x256xi32>
    %c15_i32_14 = arith.constant 15 : i32
    %35 = vector.broadcast %c15_i32_14 : i32 to vector<1x256xi32>
    %36 = arith.cmpi sle, %34, %35 : vector<1x256xi32>
    %37 = arith.andi %32, %36 : vector<1x256xi1>
    %c16_i32 = arith.constant 16 : i32
    %38 = vector.broadcast %c16_i32 : i32 to vector<1x256xi32>
    %39 = arith.addi %4, %38 : vector<1x256xi32>
    %c0_i32_15 = arith.constant 0 : i32
    %40 = vector.broadcast %c0_i32_15 : i32 to vector<1x256xi32>
    %41 = arith.cmpi sge, %39, %40 : vector<1x256xi32>
    %c16_i32_16 = arith.constant 16 : i32
    %42 = vector.broadcast %c16_i32_16 : i32 to vector<1x256xi32>
    %43 = arith.addi %4, %42 : vector<1x256xi32>
    %c255_i32_17 = arith.constant 255 : i32
    %44 = vector.broadcast %c255_i32_17 : i32 to vector<1x256xi32>
    %45 = arith.cmpi sle, %43, %44 : vector<1x256xi32>
    %46 = arith.andi %41, %45 : vector<1x256xi1>
    %47 = arith.extui %37 : vector<1x256xi1> to vector<1x256xi32>
    %48 = arith.sitofp %47 : vector<1x256xi32> to vector<1x256xf32>
    %49 = arith.extui %46 : vector<1x256xi1> to vector<1x256xi32>
    %50 = arith.sitofp %49 : vector<1x256xi32> to vector<1x256xf32>
    %c0_18 = arith.constant 0 : index
    %c0_19 = arith.constant 0 : index
    %c0_20 = arith.constant 0 : index
    %51 = vector.load %arg1[%c0_18, %c0_19, %c0_20] : memref<1x4x256xf32, #tpu.memory_space<vmem>>, vector<1x4x256xf32>
    %52 = vector.shape_cast %51 : vector<1x4x256xf32> to vector<4x256xf32>
    %cst = arith.constant dense<0.000000e+00> : vector<8x256xf32>
    %53 = tpu.matmul %0, %52, %cst {dimension_numbers = #tpu.dot_dimension_numbers<[1], [0], [0], [1], [0, 0, 1, 1], [], []>} : vector<8x4xf32>, vector<4x256xf32>, vector<8x256xf32> -> vector<8x256xf32>
    %54 = vector.broadcast %1 : vector<8x1xf32> to vector<8x256xf32>
    %55 = arith.addf %53, %54 : vector<8x256xf32>
    %c1_i32_21 = arith.constant 1 : i32
    %56 = tpu.dynamic_rotate %55 by %c1_i32_21 dim 1 : vector<8x256xf32>, i32 -> vector<8x256xf32>
    %57 = vector.broadcast %26 : vector<1x256xf32> to vector<8x256xf32>
    %58 = arith.mulf %56, %57 : vector<8x256xf32>
    %c255_i32_22 = arith.constant 255 : i32
    %59 = tpu.dynamic_rotate %55 by %c255_i32_22 dim 1 : vector<8x256xf32>, i32 -> vector<8x256xf32>
    %60 = vector.broadcast %48 : vector<1x256xf32> to vector<8x256xf32>
    %61 = arith.mulf %59, %60 : vector<8x256xf32>
    %62 = vector.extract_strided_slice %2 {offsets = [3, 0, 0], sizes = [1, 8, 1], strides = [1, 1, 1]} : vector<9x8x1xf32> to vector<1x8x1xf32>
    %63 = vector.shape_cast %62 : vector<1x8x1xf32> to vector<8x1xf32>
    %64 = vector.broadcast %63 : vector<8x1xf32> to vector<8x256xf32>
    %65 = arith.mulf %58, %64 : vector<8x256xf32>
    %66 = vector.extract_strided_slice %2 {offsets = [4, 0, 0], sizes = [1, 8, 1], strides = [1, 1, 1]} : vector<9x8x1xf32> to vector<1x8x1xf32>
    %67 = vector.shape_cast %66 : vector<1x8x1xf32> to vector<8x1xf32>
    %68 = vector.broadcast %67 : vector<8x1xf32> to vector<8x256xf32>
    %69 = arith.mulf %55, %68 : vector<8x256xf32>
    %70 = arith.addf %65, %69 : vector<8x256xf32>
    %71 = vector.extract_strided_slice %2 {offsets = [5, 0, 0], sizes = [1, 8, 1], strides = [1, 1, 1]} : vector<9x8x1xf32> to vector<1x8x1xf32>
    %72 = vector.shape_cast %71 : vector<1x8x1xf32> to vector<8x1xf32>
    %73 = vector.broadcast %72 : vector<8x1xf32> to vector<8x256xf32>
    %74 = arith.mulf %61, %73 : vector<8x256xf32>
    %75 = arith.addf %70, %74 : vector<8x256xf32>
    %76 = vector.broadcast %3 : vector<8x1xf32> to vector<8x256xf32>
    %77 = arith.addf %75, %76 : vector<8x256xf32>
    %78 = vector.extract_strided_slice %2 {offsets = [0, 0, 0], sizes = [1, 8, 1], strides = [1, 1, 1]} : vector<9x8x1xf32> to vector<1x8x1xf32>
    %79 = vector.shape_cast %78 : vector<1x8x1xf32> to vector<8x1xf32>
    %80 = vector.broadcast %79 : vector<8x1xf32> to vector<8x256xf32>
    %81 = arith.mulf %58, %80 : vector<8x256xf32>
    %82 = vector.extract_strided_slice %2 {offsets = [1, 0, 0], sizes = [1, 8, 1], strides = [1, 1, 1]} : vector<9x8x1xf32> to vector<1x8x1xf32>
    %83 = vector.shape_cast %82 : vector<1x8x1xf32> to vector<8x1xf32>
    %84 = vector.broadcast %83 : vector<8x1xf32> to vector<8x256xf32>
    %85 = arith.mulf %55, %84 : vector<8x256xf32>
    %86 = arith.addf %81, %85 : vector<8x256xf32>
    %87 = vector.extract_strided_slice %2 {offsets = [2, 0, 0], sizes = [1, 8, 1], strides = [1, 1, 1]} : vector<9x8x1xf32> to vector<1x8x1xf32>
    %88 = vector.shape_cast %87 : vector<1x8x1xf32> to vector<8x1xf32>
    %89 = vector.broadcast %88 : vector<8x1xf32> to vector<8x256xf32>
    %90 = arith.mulf %61, %89 : vector<8x256xf32>
    %91 = arith.addf %86, %90 : vector<8x256xf32>
    %c16_i32_23 = arith.constant 16 : i32
    %92 = tpu.dynamic_rotate %91 by %c16_i32_23 dim 1 : vector<8x256xf32>, i32 -> vector<8x256xf32>
    %93 = vector.broadcast %28 : vector<1x256xf32> to vector<8x256xf32>
    %94 = arith.mulf %92, %93 : vector<8x256xf32>
    %95 = arith.addf %77, %94 : vector<8x256xf32>
    %96 = vector.extract_strided_slice %2 {offsets = [6, 0, 0], sizes = [1, 8, 1], strides = [1, 1, 1]} : vector<9x8x1xf32> to vector<1x8x1xf32>
    %97 = vector.shape_cast %96 : vector<1x8x1xf32> to vector<8x1xf32>
    %98 = vector.broadcast %97 : vector<8x1xf32> to vector<8x256xf32>
    %99 = arith.mulf %58, %98 : vector<8x256xf32>
    %100 = vector.extract_strided_slice %2 {offsets = [7, 0, 0], sizes = [1, 8, 1], strides = [1, 1, 1]} : vector<9x8x1xf32> to vector<1x8x1xf32>
    %101 = vector.shape_cast %100 : vector<1x8x1xf32> to vector<8x1xf32>
    %102 = vector.broadcast %101 : vector<8x1xf32> to vector<8x256xf32>
    %103 = arith.mulf %55, %102 : vector<8x256xf32>
    %104 = arith.addf %99, %103 : vector<8x256xf32>
    %105 = vector.extract_strided_slice %2 {offsets = [8, 0, 0], sizes = [1, 8, 1], strides = [1, 1, 1]} : vector<9x8x1xf32> to vector<1x8x1xf32>
    %106 = vector.shape_cast %105 : vector<1x8x1xf32> to vector<8x1xf32>
    %107 = vector.broadcast %106 : vector<8x1xf32> to vector<8x256xf32>
    %108 = arith.mulf %61, %107 : vector<8x256xf32>
    %109 = arith.addf %104, %108 : vector<8x256xf32>
    %c240_i32 = arith.constant 240 : i32
    %110 = tpu.dynamic_rotate %109 by %c240_i32 dim 1 : vector<8x256xf32>, i32 -> vector<8x256xf32>
    %111 = vector.broadcast %50 : vector<1x256xf32> to vector<8x256xf32>
    %112 = arith.mulf %110, %111 : vector<8x256xf32>
    %113 = arith.addf %95, %112 : vector<8x256xf32>
    %c0_24 = arith.constant 0 : index
    %c0_25 = arith.constant 0 : index
    %c0_26 = arith.constant 0 : index
    %114 = vector.load %arg6[%c0_24, %c0_25, %c0_26] : memref<1x8x256xf32, #tpu.memory_space<vmem>>, vector<1x8x256xf32>
    %115 = vector.shape_cast %114 : vector<1x8x256xf32> to vector<8x256xf32>
    %116 = vector.shape_cast %113 : vector<8x256xf32> to vector<1x8x256xf32>
    tpu.vector_store %arg6[%c0_24, %c0_25, %c0_26], %116 {strides = array<i32>} : memref<1x8x256xf32, #tpu.memory_space<vmem>>, vector<1x8x256xf32>,
    return
  }
  func.func @transform_0(%arg0: i32) -> (i32, i32, i32) {
    %c0_i32 = arith.constant 0 : i32
    %c0_i32_0 = arith.constant 0 : i32
    %c0_i32_1 = arith.constant 0 : i32
    return %arg0, %c0_i32, %c0_i32_0 : i32, i32, i32
  }
  func.func @transform_1(%arg0: i32) -> (i32, i32) {
    %c0_i32 = arith.constant 0 : i32
    %c0_i32_0 = arith.constant 0 : i32
    %c0_i32_1 = arith.constant 0 : i32
    return %c0_i32, %c0_i32_0 : i32, i32
  }
  func.func @transform_2(%arg0: i32) -> (i32, i32) {
    %c0_i32 = arith.constant 0 : i32
    %c0_i32_0 = arith.constant 0 : i32
    %c0_i32_1 = arith.constant 0 : i32
    return %c0_i32, %c0_i32_0 : i32, i32
  }
  func.func @transform_3(%arg0: i32) -> (i32, i32, i32) {
    %c0_i32 = arith.constant 0 : i32
    %c0_i32_0 = arith.constant 0 : i32
    %c0_i32_1 = arith.constant 0 : i32
    %c0_i32_2 = arith.constant 0 : i32
    return %c0_i32, %c0_i32_0, %c0_i32_1 : i32, i32, i32
  }
  func.func @transform_4(%arg0: i32) -> (i32, i32) {
    %c0_i32 = arith.constant 0 : i32
    %c0_i32_0 = arith.constant 0 : i32
    %c0_i32_1 = arith.constant 0 : i32
    return %c0_i32, %c0_i32_0 : i32, i32
  }
  func.func @transform_5(%arg0: i32) -> (i32, i32, i32) {
    %c0_i32 = arith.constant 0 : i32
    %c0_i32_0 = arith.constant 0 : i32
    %c0_i32_1 = arith.constant 0 : i32
    return %arg0, %c0_i32, %c0_i32_0 : i32, i32, i32
  }
}

</mosaic_0001>

<bundles_post_ra>
// kernel: tpu_custom_call.1
= control target key start
LH: loop header
LB: loop body
LE: loop exit
PB: predicated region body
PF: predicated region fallthrough
CT: control target
= control target key end

     0   :  { %10 = vsyncpa [#allocation3], 0  ;;  %s901_s0 = inlined_call_operand.vmem [shape: f32[2,4,256], index: 0, kind: input, shape index: {}]   ;;  %s902_s1 = inlined_call_operand.vmem [shape: f32[8,4], index: 1, kind: input, shape index: {}]   ;;  %s903_s2 = inlined_call_operand.vmem [shape: f32[8,1], index: 2, kind: input, shape index: {}]   ;;  %s904_s3 = inlined_call_operand.vmem [shape: f32[9,8,1], index: 3, kind: input, shape index: {}]   ;;  %s905_s4 = inlined_call_operand.vmem [shape: f32[8,1], index: 4, kind: input, shape index: {}]   ;;  %s906_s5 = inlined_call_operand.hbm [shape: f32[2,8,256], index: 5, kind: output, shape index: {}]  }
   0x1   :  { %12 = vsyncpa [#allocation3 + $0x1], 0  ;;  %s744_s18 = smov 0   ;;  %s746_s19 = smov 0  }
   0x2   :  { %s748_s20 = smov 0   ;;  %s750_s21 = smov 0  }
   0x3 LB: > { %s765_s22 = sadd.s32 4294967295, %s705_s21   ;;  %s574_s23 = sadd.s32 4294967294, %s705_s21   ;;  %s705_s21 = sphi %s750_s21, %s912_s21   ;;  %s701_s20 = sphi %s748_s20, %s911_s20   ;;  %s697_s19 = sphi %s746_s19, %s910_s19   ;;  %s693_s18 = sphi %s744_s18, %s909_s18  }
   0x4   : > { %s769_s24 = sadd.s32 1, %s705_s21   ;;  %s135_s25 = sadd.s32 1, %s701_s20 }
   0x5   : > { %s132_s26 = ssub.s32 %s705_s21, %s769_s24  ;;  %p145_p0 = scmp.ne.s32.totalorder %s701_s20, %s697_s19 }
   0x6   : > { %p133_p1 = scmp.eq.s32.totalorder %s132_s26, 0  ;;  %p146_p2 = scmp.eq.s32.totalorder %s765_s22, 1 }
   0x7   : > { %p151_p3 = scmp.ne.s32.totalorder %s697_s19, %s693_s18  ;;  %p152_p4 = scmp.eq.s32.totalorder %s574_s23, 1 }
   0x8   : > { %s780_s27 = scalar_select %p133_p1, %s701_s20, %s135_s25  }
   0x9   : > { %p782_p5 = por %p146_p2, %p145_p0  ;;  %p786_p6 = por %p152_p4, %p151_p3 }
   0xa   : > { %p577_p7 = scmp.ge.s32.totalorder %s705_s21, 1  ;;  %p190_p8 = scmp.lt.s32.totalorder %s705_s21, 3 }
   0xc   : > { %p191_p9 = pnand %p577_p7, %p190_p8 }
   0xd   : > { %p218_p10 = scmp.lt.s32.totalorder (!%p191_p9), %s765_s22, 1  ;;  %s709_s8 = smov (!%p191_p9), 127  }
   0xe   : > { %194 = sbr.rel (%p191_p9) target bundleno = 492 (0x1ec), region = 40  ;;  %s711_s26 = smov (!%p191_p9), 16  }
   0xf   : > { %s712_s30 = smov (!%p191_p9), 112   ;;  %s215_s6 = sand.u32 (!%p191_p9), 1, %s697_s19  }
  0x10   : > { %s578_s7 = sshll.u32 (!%p191_p9), %s215_s6, 4  ;;  %s501_s14 = scalar_lea.sflag (!%p191_p9), [#allocation3], %s215_s6 }
  0x13   : > { %v707_v0 = vmov 0.0   ;;  %v708_v1 = vmov 0   ;;  %v224_v2 = vld [vmem:[%s903_s2] sm:$0xff]  ;;  %v226_v3 = vld [vmem:[%s904_s3 + $0x8] sm:$0xff]  ;;  %s219_s9 = scalar_select %p218_p10, %s765_s22, 1  ;;  %v227_v5 = vld [vmem:[%s904_s3 + $0x10] sm:$0xff]  ;;  %v235_v21 = vlaneseq }
  0x14   : > { %369 = vmatprep.mubr.f32.mxu0 %v707_v0  ;;  %642 = vset.pattern.permute.xlu0 %v708_v1  ;;  %v225_v4 = vld [vmem:[%s904_s3] sm:$0xff]  ;;  %vm300_vm0 = vcmask 1043456   ;;  %v231_v8 = vld [vmem:[%s904_s3 + $0x30] sm:$0xff]  ;;  %vm296_vm1 = vcmask 31744   ;;  %v232_v10 = vld [vmem:[%s904_s3 + $0x38] sm:$0xff] }
  0x15   : > { %291 = vperm.xlu0 %642, %v224_v2   ;;  %643 = vset.pattern.permute.xlu1 %v708_v1  ;;  %s595_s12 = sshll.u32 %s219_s9, 3  ;;  %v223_v9 = vld [vmem:[%s902_s1] sm:$0xff]  ;;  %s710_s9 = smov 1   ;;  %v228_v17 = vld [vmem:[%s904_s3 + $0x18] sm:$0xff]  ;;  %v230_v19 = vld [vmem:[%s904_s3 + $0x28] sm:$0xff]  ;;  %v842_v23 = vand.u32 127, %v235_v21 }
  0x16   : > { %435 = vperm.xlu1 %643, %v226_v3   ;;  %s222_s17 = scalar_lea.vmem %s901_s0, %s595_s12  ;;  %v233_v16 = vld [vmem:[%s904_s3 + $0x40] sm:$0xff] }
  0x17   : > { %v288_v6 = vld [vmem:[%s222_s17] sm:$0xff]  ;;  %v845_v24 = vadd.s32 128, %v842_v23  ;;  %v238_v27 = vand.u32 15, %v842_v23  ;;  %vm380_vm6 = vcmp.lt.s32.totalorder %v842_v23, 1  ;;  %vm389_vm7 = vcmp.lt.s32.totalorder %v842_v23, 127 }
  0x18   : > { %v295_v7 = vcombine.high %v288_v6, %v288_v6  ;;  %v229_v18 = vld [vmem:[%s904_s3 + $0x20] sm:$0xff]  ;;  %vm455_vm9 = vcmp.lt.s32.totalorder %v842_v23, 16  ;;  %vm491_vm11 = vcmp.lt.s32.totalorder %v842_v23, 112 }
  0x19   : > { %428 = vperm.xlu0 %642, %v225_v4   ;;  %v234_v20 = vld [vmem:[%s905_s4] sm:$0xff]  ;;  %v239_v28 = vand.u32 15, %v845_v24  ;;  %v240_v31 = vadd.s32 4294967295, %v238_v27  ;;  %v264_v33 = vadd.s32 1, %v238_v27 }
  0x1a   : > { %444 = vperm.xlu1 %643, %v227_v5   ;;  %587 = vmatprep.subr.msk.mxu0 %vm300_vm0, %v295_v7 }
  0x1b   : > { %588 = vmatpush1.msk.msra.mxu0 %vm300_vm0, %v288_v6  ;;  %v241_v32 = vadd.s32 4294967295, %v239_v28  ;;  %v265_v34 = vadd.s32 1, %v239_v28  ;;  %vm242_vm2 = vcmp.ge.s32.totalorder %v240_v31, 0  ;;  %vm268_vm4 = vcmp.le.s32.totalorder %v264_v33, 15 }
  0x1c   : > { %589 = vmatmul.mubr.msk.f32.vlgmr.msra.gmra.mxu0 %vm296_vm1, %v223_v9  ;;  %v581_v37 = vsel %vm242_vm2, 1.0, %v707_v0  ;;  %v584_v39 = vsel %vm268_vm4, 1.0, %v707_v0 }
  0x1d   : > { %464 = vperm.xlu0 %642, %v231_v8   ;;  %vm243_vm3 = vcmp.ge.s32.totalorder %v241_v32, 0  ;;  %vm269_vm5 = vcmp.le.s32.totalorder %v265_v34, 15 }
  0x1e   : > { %471 = vperm.xlu1 %643, %v232_v10   ;;  %v582_v38 = vsel %vm243_vm3, 1.0, %v707_v0  ;;  %v585_v40 = vsel %vm269_vm5, 1.0, %v707_v0 }
  0x90   : > { %v292_v11 = vpop.permute.xlu0 %291 }
  0x91   : > { %v436_v22 = vpop.permute.xlu1 %435 }
  0x94   : > { %v429_v25 = vpop.permute.xlu0 %428 }
  0x95   : > { %v445_v26 = vpop.permute.xlu1 %444 }
  0x98   : > { %v465_v29 = vpop.permute.xlu0 %464 }
  0x99   : > { %v472_v30 = vpop.permute.xlu1 %471 }
  0xdc   : > { %v371_v12 = vpop.f32.mrf.mxu0 }
  0xdd   : > { %v819_v13 = vadd.f32 %v371_v12, %v292_v11 }
  0xde   : > { %v373_v14 = vpop.f32.mrf.mxu0 }
  0xdf   : > { %385 = vrot.lane.b32.xlu0 %v819_v13, %s709_s8  ;;  %376 = vrot.lane.b32.xlu1 %v819_v13, %s710_s9  ;;  %v823_v15 = vadd.f32 %v373_v14, %v292_v11  ;;  %v438_v54 = vmul.f32 %v436_v22, %v819_v13  ;;  %v474_v63 = vmul.f32 %v472_v30, %v819_v13 }
  0xe1   : > { %v439_v53 = vmul.f32 %v436_v22, %v823_v15  ;;  %v475_v1 = vmul.f32 %v472_v30, %v823_v15 }
  0xe3   : > { %378 = vrot.lane.b32.xlu0 %v823_v15, %s710_s9  ;;  %387 = vrot.lane.b32.xlu1 %v823_v15, %s709_s8  ;;  %s596_s8 = sshll.u32 %s765_s22, 8  ;;  %s217_s9 = scalar_lea.vmem [#allocation2], %s578_s7 }
  0xe4   : > { %s515_s10 = sshll.u32 %s217_s9, 4  ;;  %s513_s13 = scalar_lea.hbm %s906_s5, %s596_s8  ;;  %s516_s10 = int_to_ptr.vmem [resolvable:$true] %s515_s10 }
  0xe5   : > { %s645_s15 = scalar_lea.vmem %s516_s10, 256  ;;  %s713_s22 = smov [#allocation2]  }
  0xe6   : > { %p646_p11 = scmp.ne.s32.totalorder %s516_s10, %s645_s15  ;;  %s649_s16 = sshll.u32 %s713_s22, 4  ;;  %s650_s16 = int_to_ptr.vmem [resolvable:$false] %s649_s16 }
  0xe7   : > { %480 = vperm.xlu0 %642, %v233_v16   ;;  %396 = vperm.xlu1 %643, %v228_v17   ;;  %s651_s17 = scalar_lea.vmem %s650_s16, 512  ;;  %p652_p0 = scmp.lt.s32.totalorder %s516_s10, %s650_s16 }
  0xe8   : > { %p647_p12 = pnand %p646_p11, %p782_p5  ;;  %p653_p1 = scmp.lt.s32.totalorder %s651_s17, %s645_s15 }
  0xea   : > { %p648_p13 = pneg %p647_p12  ;;  %p654_p2 = por %p653_p1, %p652_p0 }
  0xeb   : > { %403 = vperm.xlu0 %642, %v229_v18   ;;  %412 = vperm.xlu1 %643, %v230_v19  }
  0xec   : > { %p655_p3 = pnand %p654_p2, %p648_p13 }
  0xef   : > { %421 = vperm.xlu0 %642, %v234_v20  }
 0x151   : > { %v386_v35 = vpop.permute.xlu0 %385  ;;  %v377_v36 = vpop.permute.xlu1 %376 }
 0x155   : > { %v379_v41 = vpop.permute.xlu0 %378  ;;  %v388_v42 = vpop.permute.xlu1 %387 }
 0x156   : > { %v381_v43 = vsel %vm380_vm6, %v377_v36, %v379_v41  ;;  %v382_v44 = vsel %vm380_vm6, %v379_v41, %v377_v36  ;;  %v390_v45 = vsel %vm389_vm7, %v386_v35, %v388_v42  ;;  %v391_v46 = vsel %vm389_vm7, %v388_v42, %v386_v35 }
 0x157   : > { %v383_v47 = vmul.f32 %v581_v37, %v382_v44  ;;  %v384_v48 = vmul.f32 %v582_v38, %v381_v43  ;;  %v392_v49 = vmul.f32 %v584_v39, %v390_v45  ;;  %v393_v50 = vmul.f32 %v585_v40, %v391_v46 }
 0x159   : > { %v431_v51 = vmul.f32 %v429_v25, %v383_v47  ;;  %v432_v52 = vmul.f32 %v429_v25, %v384_v48  ;;  %v448_v56 = vmul.f32 %v445_v26, %v393_v50  ;;  %v447_v58 = vmul.f32 %v445_v26, %v392_v49 }
 0x15a   : > { %v467_v61 = vmul.f32 %v465_v29, %v383_v47  ;;  %v468_v62 = vmul.f32 %v465_v29, %v384_v48  ;;  %v248_v26 = vadd.s32 4294967280, %v842_v23 }
 0x15b   : > { %v441_v55 = vadd.f32 %v439_v53, %v432_v52  ;;  %v440_v57 = vadd.f32 %v438_v54, %v431_v51 }
 0x15c   : > { %v476_v4 = vadd.f32 %v474_v63, %v467_v61  ;;  %v477_v5 = vadd.f32 %v475_v1, %v468_v62  ;;  %vm250_vm8 = vcmp.ge.s32.totalorder %v248_v26, 0 }
 0x15d   : > { %v450_v59 = vadd.f32 %v448_v56, %v441_v55  ;;  %v449_v60 = vadd.f32 %v447_v58, %v440_v57  ;;  %v583_v29 = vsel %vm250_vm8, 1.0, %v707_v0 }
 0x15f   : > { %453 = vrot.lane.b32.xlu0 %v450_v59, %s711_s26  ;;  %451 = vrot.lane.b32.xlu1 %v449_v60, %s711_s26 }
 0x162   : > { %v481_v2 = vpop.permute.xlu0 %480  ;;  %v397_v3 = vpop.permute.xlu1 %396 }
 0x163   : > { %v483_v6 = vmul.f32 %v481_v2, %v392_v49  ;;  %v484_v7 = vmul.f32 %v481_v2, %v393_v50  ;;  %v399_v12 = vmul.f32 %v397_v3, %v383_v47  ;;  %v400_v14 = vmul.f32 %v397_v3, %v384_v48 }
 0x165   : > { %v485_v8 = vadd.f32 %v483_v6, %v476_v4  ;;  %v486_v9 = vadd.f32 %v484_v7, %v477_v5 }
 0x166   : > { %v404_v10 = vpop.permute.xlu0 %403  ;;  %v413_v11 = vpop.permute.xlu1 %412 }
 0x167   : > { %v406_v16 = vmul.f32 %v404_v10, %v819_v13  ;;  %v407_v17 = vmul.f32 %v404_v10, %v823_v15  ;;  %489 = vrot.lane.b32.xlu0 %v486_v9, %s712_s30  ;;  %487 = vrot.lane.b32.xlu1 %v485_v8, %s712_s30  ;;  %v415_v20 = vmul.f32 %v413_v11, %v392_v49  ;;  %v273_v15 = vadd.s32 16, %v845_v24 }
 0x168   : > { %v416_v21 = vmul.f32 %v413_v11, %v393_v50 }
 0x169   : > { %v408_v18 = vadd.f32 %v406_v16, %v399_v12  ;;  %v409_v19 = vadd.f32 %v407_v17, %v400_v14  ;;  %vm277_vm10 = vcmp.le.s32.totalorder %v273_v15, 255 }
 0x16a   : > { %v422_v27 = vpop.permute.xlu0 %421  ;;  %v586_v35 = vsel %vm277_vm10, 1.0, %v707_v0 }
 0x16b   : > { %v417_v22 = vadd.f32 %v415_v20, %v408_v18  ;;  %v418_v25 = vadd.f32 %v416_v21, %v409_v19 }
 0x16d   : > { %v424_v32 = vadd.f32 %v422_v27, %v417_v22  ;;  %v425_v36 = vadd.f32 %v422_v27, %v418_v25 }
 0x1d1   : > { %v454_v28 = vpop.permute.xlu0 %453  ;;  %v452_v13 = vpop.permute.xlu1 %451 }
 0x1d2   : > { %v457_v30 = vsel %vm455_vm9, %v454_v28, %v452_v13  ;;  %v456_v33 = vsel %vm455_vm9, %v452_v13, %v454_v28 }
 0x1d3   : > { %v458_v31 = vmul.f32 %v583_v29, %v457_v30  ;;  %v461_v40 = vadd.f32 %v456_v33, %v425_v36 }
 0x1d5   : > { %v460_v37 = vadd.f32 %v458_v31, %v424_v32 }
 0x1d9   : > { %v490_v34 = vpop.permute.xlu0 %489  ;;  %v488_v38 = vpop.permute.xlu1 %487 }
 0x1da   : > { %v492_v39 = vsel %vm491_vm11, %v488_v38, %v490_v34  ;;  %v493_v24 = vsel %vm491_vm11, %v490_v34, %v488_v38 }
 0x1db   : > { %v495_v41 = vmul.f32 %v586_v35, %v493_v24  ;;  %v496_v42 = vadd.f32 %v492_v39, %v460_v37 }
 0x1dd   : > { %v497_v43 = vadd.f32 %v495_v41, %v461_v40  ;;  %498 = vst [vmem:[%s217_s9] sm:$0xff] %v496_v42 }
 0x1df   : > { %499 = vst [vmem:[%s217_s9 + $0x8] sm:$0xff] %v497_v43 }
 0x1e0   : > { %658 = shalt.err (!%p655_p3)
}
 0x1e1   : > { %s659_s23 = scalar_lea.hbm %s513_s13, 256  ;;  %s663_s30 = scalar_lea.hbm %s906_s5, 512 }
 0x1e2   : > { %p660_p4 = scmp.ne.s32.totalorder %s513_s13, %s659_s23  ;;  %p664_p9 = scmp.lt.s32.totalorder %s513_s13, %s906_s5 }
 0x1e3   : > { %p665_p10 = scmp.lt.s32.totalorder %s663_s30, %s659_s23 }
 0x1e4   : > { %p661_p7 = pnand %p660_p4, %p782_p5 }
 0x1e5   : > { %p666_p11 = por %p665_p10, %p664_p9 }
 0x1e6   : > { %p662_p8 = pneg %p661_p7 }
 0x1e8   : > { %p667_p12 = pnand %p666_p11, %p662_p8 }
 0x1ea   : > { %670 = shalt.err (!%p667_p12)
}
 0x1eb   : > { %597 = dma.vmem_to_hbm [thread:$0]  (%p782_p5), %s516_s10, 256, %s513_s13, %s501_s14  }
 0x1ec PF: > { %p603_p13 = scmp.ge.s32.totalorder %s705_s21, 2  ;;  %s527_s8 = sand.u32 1, %s693_s18  }
 0x1ed   : > { %s528_s9 = scalar_lea.sflag [#allocation3], %s527_s8 }
 0x1ee   : > { %p600_p0 = pnand %p603_p13, %p786_p6 }
 0x1f0   : > { %p601_p1 = pneg %p600_p0 }
 0x1f2   : > { %688 = dma.done.wait (%p601_p1), %s528_s9, 256  }
 0x1f3   : > { %690 = vsyncadd (%p601_p1), %s528_s9, 4294967040  ;;  %p15_p2 = scmp.ge.s32.totalorder %s769_s24, 4   ;;  %s909_s18 = smov %s697_s19 }
 0x1f4   : > { %s910_s19 = smov %s701_s20  ;;  %s911_s20 = smov %s780_s27 }
 0x1f5   : > { %s912_s21 = smov %s769_s24  ;;  %17 = sbr.rel (!%p15_p2) target bundleno = 3 (0x3), region = 75 }
 0x1fa   :  { %533 = vsyncpa [#allocation3], 1 }
 0x1fb   :  { %535 = vsyncpa [#allocation3 + $0x1], 1 }

</bundles_post_ra>
